<compile_context>
chip_gen: v5e
topology: v5e:2x2
jax: 0.10.0
libtpu: 0.0.40
codegen_flags: <defaults>
</compile_context>

<pallas_src>
import jax
import jax.numpy as jnp
from jax import lax
from jax.experimental import pallas as pl
from jax.experimental.pallas import tpu as pltpu


# ----------------------------------------------------------------------------
# Tiling helpers
# ----------------------------------------------------------------------------
def _round_up(x, m):
    return (x + m - 1) // m * m


def _row_tiling(n):
    """Row tile tm (multiple of 8, <= 512) and padded row count (multiple of tm)."""
    tm = min(512, _round_up(max(n, 1), 8))
    n_pad = _round_up(n, tm)
    return tm, n_pad


def _time_block(t, tm, d, itemsize):
    """Largest divisor of t such that one x block stays <=4MiB and Tb*tm <= 1024."""
    best = 1
    for tb in range(1, t + 1):
        if t % tb:
            continue
        if tb * tm <= 1024 and tb * tm * d * itemsize <= (4 << 20):
            best = tb
    return best


def _vmem_limit(working_set_bytes):
    """Scoped-VMEM request: 2x working set + slack, floored at 32 MiB."""
    return int(min(128 << 20, max(2 * working_set_bytes + (4 << 20), 32 << 20)))


# ----------------------------------------------------------------------------
# Fused  linear + cross-entropy  (serves both 'celoss' and 'temporal').
#   grid = (row_tiles, time_blocks); output block (1,1,128) indexed by row tile,
#   accumulated over the (last, "arbitrary") time axis; row axis is "parallel".
# ----------------------------------------------------------------------------
def _make_ce_kernel(mm_dtype):
    def kernel(x_ref, w_ref, b_ref, lab_ref, nv_ref, o_ref):
        r = pl.program_id(0)            # row-tile index  ("parallel")
        t = pl.program_id(1)            # time-block index ("arbitrary", reduction)

        @pl.when(t == 0)
        def _():
            o_ref[...] = jnp.zeros_like(o_ref)

        x = x_ref[...]                                   # (Tb, tm, D)
        tb, tm, d = x.shape
        x2 = x.reshape(tb * tm, d)                       # feed MXU with M = Tb*tm
        w = w_ref[...]
        if mm_dtype is not None:
            x2 = x2.astype(mm_dtype)
            w = w.astype(mm_dtype)
        pred = (jnp.dot(x2, w, preferred_element_type=jnp.float32)
                + b_ref[...])                            # (Tb*tm, C) f32
        c = pred.shape[1]
        pred3 = pred.reshape(tb, tm, c)

        labels = lab_ref[...]                            # (tm, 1) int32
        # one onehot per row tile, reused across the Tb time steps in this block
        onehot = lax.broadcasted_iota(jnp.int32, (tm, c), 1) == labels
        fy = jnp.sum(jnp.where(onehot[None], pred3, 0.0), axis=2, keepdims=True)
        m = jnp.max(pred3, axis=2, keepdims=True)
        lse = m + jnp.log(jnp.sum(jnp.exp(pred3 - m), axis=2, keepdims=True))

        # zero contribution of batch-padding rows (row id >= true N)
        row_ids = r * tm + lax.broadcasted_iota(jnp.int32, (tm, 1), 0)
        valid = row_ids < nv_ref[0, 0]
        partial = jnp.sum(jnp.where(valid[None], lse - fy, 0.0))

        o_ref[...] += partial                            # lane-dense partial sum

    return kernel


def ce_loss_fused(x_tnd, w, b, label, *, matmul_dtype=jnp.bfloat16):
    """Mean over (t, i) of CE(x[t, i] @ W + b, label[i]).  x_tnd: (T, N, D)."""
    t_total, n, d = x_tnd.shape
    c = w.shape[1]
    tm, n_pad = _row_tiling(n)
    num_row_tiles = n_pad // tm
    tb = _time_block(t_total, tm, d, x_tnd.dtype.itemsize)
    t_steps = t_total // tb

    if n_pad != n:
        # TODO(synk): produce row-padded batches upstream to avoid this HBM copy.
        x_tnd = jnp.pad(x_tnd, ((0, 0), (0, n_pad - n), (0, 0)))
        label = jnp.pad(label, (0, n_pad - n))
    label2d = label.reshape(n_pad, 1).astype(jnp.int32)
    n_valid = jnp.array([[n]], dtype=jnp.int32)

    x_tile_bytes = tb * tm * d * x_tnd.dtype.itemsize
    working_set = (d * c * 4 + c * 4                  # resident W, b (single copy)
                   + 2 * x_tile_bytes + 2 * tm * 4    # double-buffered x / labels
                   + 2 * 128 * 4                      # output block
                   + 4 * tb * tm * c * 4)             # epilogue intermediates
    params = pltpu.CompilerParams(
        dimension_semantics=("parallel", "arbitrary"),
        vmem_limit_bytes=_vmem_limit(working_set))

    partials = pl.pallas_call(
        _make_ce_kernel(matmul_dtype),
        out_shape=jax.ShapeDtypeStruct((num_row_tiles, 1, 128), jnp.float32),
        grid_spec=pltpu.PrefetchScalarGridSpec(
            num_scalar_prefetch=0,
            grid=(num_row_tiles, t_steps),
            in_specs=[
                pl.BlockSpec((tb, tm, d), lambda r, t: (t, r, 0)),      # x tile
                pl.BlockSpec(memory_space=pltpu.MemorySpace.VMEM),      # W resident (1 copy)
                pl.BlockSpec(memory_space=pltpu.MemorySpace.VMEM),      # b resident (1 copy)
                pl.BlockSpec((tm, 1), lambda r, t: (r, 0)),             # labels
                pl.BlockSpec(memory_space=pltpu.MemorySpace.SMEM),      # n_valid
            ],
            out_specs=pl.BlockSpec((1, 1, 128), lambda r, t: (r, 0, 0)),
        ),
        compiler_params=params,
    )(x_tnd, w, b.reshape(1, c), label2d, n_valid)

    # final scale + cross-tile reduction in the wrapper (precision + parallel rows)
    return jnp.sum(partials[:, 0, 0]) * (1.0 / (n * t_total))


# ----------------------------------------------------------------------------
# Fused  linear + "pnnloss" (standard):
#   fy   = pred[i, label[i]]
#   fnym = max_j (pred with pred[i, label[i]] <- -1e10)
#   l_i  = max(m + T - fy, 0) + max(m + fnym, 0) ; L = mean(l)
# ----------------------------------------------------------------------------
def _make_pnn_kernel(mm_dtype):
    def kernel(x_ref, w_ref, b_ref, lab_ref, nv_ref, mt_ref, o_ref):
        r = pl.program_id(0)
        margin = mt_ref[0, 0]
        temp = mt_ref[0, 1]

        x = x_ref[...]                                   # (tm, D)
        w = w_ref[...]
        if mm_dtype is not None:
            x = x.astype(mm_dtype)
            w = w.astype(mm_dtype)
        pred = (jnp.dot(x, w, preferred_element_type=jnp.float32)
                + b_ref[...])                            # (tm, C) f32
        tm, c = pred.shape

        labels = lab_ref[...]                            # (tm, 1) int32
        onehot = lax.broadcasted_iota(jnp.int32, (tm, c), 1) == labels
        fy = jnp.sum(jnp.where(onehot, pred, 0.0), axis=1, keepdims=True)
        fnym = jnp.max(jnp.where(onehot, jnp.float32(-1e10), pred),
                       axis=1, keepdims=True)
        l = (jnp.maximum(margin + temp - fy, 0.0)
             + jnp.maximum(margin + fnym, 0.0))          # (tm, 1)

        row_ids = r * tm + lax.broadcasted_iota(jnp.int32, (tm, 1), 0)
        valid = row_ids < nv_ref[0, 0]
        partial = jnp.sum(jnp.where(valid, l, 0.0))
        o_ref[...] = jnp.full(o_ref.shape, partial, dtype=o_ref.dtype)

    return kernel


def pnn_loss_fused(x, w, b, label, margin, temp, *, matmul_dtype=jnp.bfloat16):
    n, d = x.shape
    c = w.shape[1]
    tm, n_pad = _row_tiling(n)
    num_row_tiles = n_pad // tm
    if n_pad != n:
        x = jnp.pad(x, ((0, n_pad - n), (0, 0)))
        label = jnp.pad(label, (0, n_pad - n))
    label2d = label.reshape(n_pad, 1).astype(jnp.int32)
    n_valid = jnp.array([[n]], dtype=jnp.int32)
    mt = jnp.array([[margin, temp]], dtype=jnp.float32)      # SMEM scalars

    x_tile_bytes = tm * d * x.dtype.itemsize
    working_set = (d * c * 4 + c * 4 + 2 * x_tile_bytes + 2 * tm * 4
                   + 2 * 128 * 4 + 4 * tm * c * 4)
    params = pltpu.CompilerParams(
        dimension_semantics=("parallel",),
        vmem_limit_bytes=_vmem_limit(working_set))

    partials = pl.pallas_call(
        _make_pnn_kernel(matmul_dtype),
        out_shape=jax.ShapeDtypeStruct((num_row_tiles, 1, 128), jnp.float32),
        grid_spec=pltpu.PrefetchScalarGridSpec(
            num_scalar_prefetch=0,
            grid=(num_row_tiles,),
            in_specs=[
                pl.BlockSpec((tm, d), lambda r: (r, 0)),                # x tile
                pl.BlockSpec(memory_space=pltpu.MemorySpace.VMEM),      # W resident
                pl.BlockSpec(memory_space=pltpu.MemorySpace.VMEM),      # b resident
                pl.BlockSpec((tm, 1), lambda r: (r, 0)),                # labels
                pl.BlockSpec(memory_space=pltpu.MemorySpace.SMEM),      # n_valid
                pl.BlockSpec(memory_space=pltpu.MemorySpace.SMEM),      # margin, T
            ],
            out_specs=pl.BlockSpec((1, 1, 128), lambda r: (r, 0, 0)),
        ),
        compiler_params=params,
    )(x, w, b.reshape(1, c), label2d, n_valid, mt)

    return jnp.sum(partials[:, 0, 0]) * (1.0 / n)


# ----------------------------------------------------------------------------
# LossFN wrapper mirroring the PyTorch module's forward dispatch.
# The network `nn` is the deterministic linear layer (W, b), fused into the
# loss kernels (forward takes the layer parameters instead of a callable).
# ----------------------------------------------------------------------------
class Args:
    def __init__(self, loss, m=0.5, T=1.0):
        self.loss = loss
        self.m = m
        self.T = T


class LossFN:
    def __init__(self, args):
        self.args = args

    def forward(self, nn_params, x, label):
        w, b = nn_params
        if self.args.loss == 'pnnloss':
            return pnn_loss_fused(x, w, b, label, self.args.m, self.args.T)
        elif self.args.loss == 'celoss':
            return ce_loss_fused(x[None], w, b, label)            # T = 1
        elif self.args.loss == 'temporal':
            # Reference layout is (N, D, T); the kernel wants lane-dense (T, N, D).
            # TODO(synk): produce x as (T, N, D) upstream (or fuse this transpose
            # into the producer): this moveaxis is an extra full HBM round-trip.
            x_tnd = jnp.moveaxis(x, 2, 0)
            return ce_loss_fused(x_tnd, w, b, label)


# ----------------------------------------------------------------------------
# Pure-JAX references (correctness check only; use the same bf16-input matmul
# path as the kernels so the comparison is apples-to-apples).
# ----------------------------------------------------------------------------
def _mm_ref(a, w, dtype):
    if dtype is None:
        return jnp.dot(a, w, preferred_element_type=jnp.float32)
    return jnp.dot(a.astype(dtype), w.astype(dtype),
                   preferred_element_type=jnp.float32)


def _ref_ce(pred, label):
    lse = jax.nn.logsumexp(pred, axis=1)
    fy = jnp.take_along_axis(pred, label[:, None], axis=1)[:, 0]
    return jnp.mean(lse - fy)


def _ref_pnn(pred, label, m, T):
    fy = jnp.take_along_axis(pred, label[:, None], axis=1)
    fny = pred.at[jnp.arange(pred.shape[0]), label].set(-1e10)
    fnym = jnp.max(fny, axis=1, keepdims=True)
    l = jnp.maximum(m + T - fy, 0.0) + jnp.maximum(m + fnym, 0.0)
    return jnp.mean(l)


if __name__ == "__main__":
    N, D, C, Tsteps = 8, 32, 16, 4

    key = jax.random.PRNGKey(0)
    kx, kxt, kw, kb, kl = jax.random.split(key, 5)

    # deterministic "network" parameters (linear layer)
    W = jax.random.normal(kw, (D, C), dtype=jnp.float32) * 0.1
    b = jax.random.normal(kb, (C,), dtype=jnp.float32) * 0.01
    nn_params = (W, b)

    x = jax.random.normal(kx, (N, D), dtype=jnp.float32)
    x_temporal = jax.random.normal(kxt, (N, D, Tsteps), dtype=jnp.float32)
    label = jax.random.randint(kl, (N,), 0, C, dtype=jnp.int32)

    l_pnn = LossFN(Args('pnnloss', m=0.5, T=1.0)).forward(nn_params, x, label)
    l_ce = LossFN(Args('celoss')).forward(nn_params, x, label)
    l_tmp = LossFN(Args('temporal')).forward(nn_params, x_temporal, label)
    jax.block_until_ready((l_pnn, l_ce, l_tmp))

    # correctness check against pure-JAX reference (same bf16-matmul path)
    mmdt = jnp.bfloat16
    logits = _mm_ref(x, W, mmdt) + b
    ref_pnn = _ref_pnn(logits, label, 0.5, 1.0)
    ref_ce = _ref_ce(logits, label)
    ref_tmp = jnp.mean(jnp.stack(
        [_ref_ce(_mm_ref(x_temporal[:, :, t], W, mmdt) + b, label)
         for t in range(Tsteps)]))
    assert jnp.allclose(l_pnn, ref_pnn, rtol=1e-3, atol=2e-3), (l_pnn, ref_pnn)
    assert jnp.allclose(l_ce, ref_ce, rtol=1e-3, atol=2e-3), (l_ce, ref_ce)
    assert jnp.allclose(l_tmp, ref_tmp, rtol=1e-3, atol=2e-3), (l_tmp, ref_tmp)

    print("KERNEL_OK")
</pallas_src>

<mosaic_0001>
module attributes {stable_mosaic.version = 11 : i64} {
  func.func @kernel(%arg0: i32, %arg1: memref<8x32xf32, #tpu.memory_space<vmem>>, %arg2: memref<32x16xf32, #tpu.memory_space<vmem>>, %arg3: memref<1x16xf32, #tpu.memory_space<vmem>>, %arg4: memref<8x1xi32, #tpu.memory_space<vmem>>, %arg5: memref<1x1xi32, #tpu.memory_space<smem>>, %arg6: memref<1x2xf32, #tpu.memory_space<smem>>, %arg7: memref<1x1x128xf32, #tpu.memory_space<vmem>>) attributes {dimension_semantics = [#tpu.dimension_semantics<parallel>], iteration_bounds = array<i64: 1>, scalar_prefetch = 0 : i64, scratch_operands = 0 : i64, tpu.core_type = #tpu.core_type<tc>, window_params = [{transform_indices = @transform_0, window_bounds = array<i64: 8, 32>}, {pipeline_mode = #tpu.pipeline_mode<synchronous>, transform_indices = @transform_1, window_bounds = array<i64: 32, 16>}, {pipeline_mode = #tpu.pipeline_mode<synchronous>, transform_indices = @transform_2, window_bounds = array<i64: 1, 16>}, {transform_indices = @transform_3, window_bounds = array<i64: 8, 1>}, {transform_indices = @transform_4, window_bounds = array<i64: 1, 1>}, {transform_indices = @transform_5, window_bounds = array<i64: 1, 2>}, {transform_indices = @transform_6, window_bounds = array<i64: 1, 1, 128>}]} {
    %c0 = arith.constant 0 : index
    %c0_0 = arith.constant 0 : index
    %0 = memref.load %arg6[%c0, %c0_0] : memref<1x2xf32, #tpu.memory_space<smem>>
    %c0_1 = arith.constant 0 : index
    %c1 = arith.constant 1 : index
    %1 = memref.load %arg6[%c0_1, %c1] : memref<1x2xf32, #tpu.memory_space<smem>>
    %c0_2 = arith.constant 0 : index
    %c0_3 = arith.constant 0 : index
    %2 = vector.load %arg1[%c0_2, %c0_3] : memref<8x32xf32, #tpu.memory_space<vmem>>, vector<8x32xf32>
    %c0_4 = arith.constant 0 : index
    %c0_5 = arith.constant 0 : index
    %3 = vector.load %arg2[%c0_4, %c0_5] : memref<32x16xf32, #tpu.memory_space<vmem>>, vector<32x16xf32>
    %4 = arith.truncf %2 : vector<8x32xf32> to vector<8x32xbf16>
    %5 = arith.truncf %3 : vector<32x16xf32> to vector<32x16xbf16>
    %cst = arith.constant dense<0.000000e+00> : vector<8x16xf32>
    %6 = tpu.matmul %4, %5, %cst {dimension_numbers = #tpu.dot_dimension_numbers<[1], [0], [0], [1], [0, 0, 1, 1], [], []>} : vector<8x32xbf16>, vector<32x16xbf16>, vector<8x16xf32> -> vector<8x16xf32>
    %c0_6 = arith.constant 0 : index
    %c0_7 = arith.constant 0 : index
    %7 = vector.load %arg3[%c0_6, %c0_7] : memref<1x16xf32, #tpu.memory_space<vmem>>, vector<1x16xf32>
    %8 = vector.broadcast %7 : vector<1x16xf32> to vector<8x16xf32>
    %9 = arith.addf %6, %8 : vector<8x16xf32>
    %c0_8 = arith.constant 0 : index
    %c0_9 = arith.constant 0 : index
    %10 = vector.load %arg4[%c0_8, %c0_9] : memref<8x1xi32, #tpu.memory_space<vmem>>, vector<8x1xi32>
    %11 = tpu.iota {dimensions = array<i32: 1>} : vector<8x16xi32>
    %12 = vector.broadcast %10 : vector<8x1xi32> to vector<8x16xi32>
    %13 = arith.cmpi eq, %11, %12 : vector<8x16xi32>
    %cst_10 = arith.constant 0.000000e+00 : f32
    %14 = vector.broadcast %cst_10 : f32 to vector<8x16xf32>
    %15 = arith.select %13, %9, %14 : vector<8x16xi1>, vector<8x16xf32>
    %cst_11 = arith.constant dense<0.000000e+00> : vector<8xf32>
    %16 = vector.multi_reduction <add>, %15, %cst_11 [1] : vector<8x16xf32> to vector<8xf32>
    %17 = vector.shape_cast %16 : vector<8xf32> to vector<8x1xf32>
    %cst_12 = arith.constant -1.000000e+10 : f32
    %18 = vector.broadcast %cst_12 : f32 to vector<8x16xf32>
    %19 = arith.select %13, %18, %9 : vector<8x16xi1>, vector<8x16xf32>
    %cst_13 = arith.constant dense<0xFF800000> : vector<8xf32>
    %20 = vector.multi_reduction <maximumf>, %19, %cst_13 [1] : vector<8x16xf32> to vector<8xf32>
    %21 = vector.shape_cast %20 : vector<8xf32> to vector<8x1xf32>
    %22 = arith.addf %0, %1 : f32
    %23 = vector.broadcast %22 : f32 to vector<8x1xf32>
    %24 = arith.subf %23, %17 : vector<8x1xf32>
    %cst_14 = arith.constant 0.000000e+00 : f32
    %25 = vector.broadcast %cst_14 : f32 to vector<8x1xf32>
    %26 = arith.maximumf %24, %25 : vector<8x1xf32>
    %27 = vector.broadcast %0 : f32 to vector<8x1xf32>
    %28 = arith.addf %27, %21 : vector<8x1xf32>
    %cst_15 = arith.constant 0.000000e+00 : f32
    %29 = vector.broadcast %cst_15 : f32 to vector<8x1xf32>
    %30 = arith.maximumf %28, %29 : vector<8x1xf32>
    %31 = arith.addf %26, %30 : vector<8x1xf32>
    %c8_i32 = arith.constant 8 : i32
    %32 = arith.muli %arg0, %c8_i32 : i32
    %33 = tpu.iota {dimensions = array<i32: 0>} : vector<8x1xi32>
    %34 = vector.broadcast %32 : i32 to vector<8x1xi32>
    %35 = arith.addi %34, %33 : vector<8x1xi32>
    %c0_16 = arith.constant 0 : index
    %c0_17 = arith.constant 0 : index
    %36 = memref.load %arg5[%c0_16, %c0_17] : memref<1x1xi32, #tpu.memory_space<smem>>
    %37 = vector.broadcast %36 : i32 to vector<8x1xi32>
    %38 = arith.cmpi slt, %35, %37 : vector<8x1xi32>
    %cst_18 = arith.constant 0.000000e+00 : f32
    %39 = vector.broadcast %cst_18 : f32 to vector<8x1xf32>
    %40 = arith.select %38, %31, %39 : vector<8x1xi1>, vector<8x1xf32>
    %41 = vector.shape_cast %40 : vector<8x1xf32> to vector<1x8x1xf32>
    %cst_19 = arith.constant dense<0.000000e+00> : vector<1xf32>
    %42 = vector.multi_reduction <add>, %41, %cst_19 [1, 2] : vector<1x8x1xf32> to vector<1xf32>
    %43 = vector.shape_cast %42 : vector<1xf32> to vector<1x1x1xf32>
    %44 = vector.extract %43[0, 0, 0] : f32 from vector<1x1x1xf32>
    %45 = vector.broadcast %44 : f32 to vector<1x1x128xf32>
    %c0_20 = arith.constant 0 : index
    %c0_21 = arith.constant 0 : index
    %c0_22 = arith.constant 0 : index
    %46 = vector.load %arg7[%c0_20, %c0_21, %c0_22] : memref<1x1x128xf32, #tpu.memory_space<vmem>>, vector<1x1x128xf32>
    tpu.vector_store %arg7[%c0_20, %c0_21, %c0_22], %45 {strides = array<i32>} : memref<1x1x128xf32, #tpu.memory_space<vmem>>, vector<1x1x128xf32>,
    return
  }
  func.func @transform_0(%arg0: i32) -> (i32, i32) {
    %c0_i32 = arith.constant 0 : i32
    %c0_i32_0 = arith.constant 0 : i32
    return %arg0, %c0_i32 : i32, i32
  }
  func.func @transform_1(%arg0: i32) -> (i32, i32) {
    %c0_i32 = arith.constant 0 : i32
    %c0_i32_0 = arith.constant 0 : i32
    %c0_i32_1 = arith.constant 0 : i32
    return %c0_i32, %c0_i32_0 : i32, i32
  }
  func.func @transform_2(%arg0: i32) -> (i32, i32) {
    %c0_i32 = arith.constant 0 : i32
    %c0_i32_0 = arith.constant 0 : i32
    %c0_i32_1 = arith.constant 0 : i32
    return %c0_i32, %c0_i32_0 : i32, i32
  }
  func.func @transform_3(%arg0: i32) -> (i32, i32) {
    %c0_i32 = arith.constant 0 : i32
    %c0_i32_0 = arith.constant 0 : i32
    return %arg0, %c0_i32 : i32, i32
  }
  func.func @transform_4(%arg0: i32) -> (i32, i32) {
    %c0_i32 = arith.constant 0 : i32
    %c0_i32_0 = arith.constant 0 : i32
    %c0_i32_1 = arith.constant 0 : i32
    return %c0_i32, %c0_i32_0 : i32, i32
  }
  func.func @transform_5(%arg0: i32) -> (i32, i32) {
    %c0_i32 = arith.constant 0 : i32
    %c0_i32_0 = arith.constant 0 : i32
    %c0_i32_1 = arith.constant 0 : i32
    return %c0_i32, %c0_i32_0 : i32, i32
  }
  func.func @transform_6(%arg0: i32) -> (i32, i32, i32) {
    %c0_i32 = arith.constant 0 : i32
    %c0_i32_0 = arith.constant 0 : i32
    %c0_i32_1 = arith.constant 0 : i32
    return %arg0, %c0_i32, %c0_i32_0 : i32, i32, i32
  }
}

</mosaic_0001>

<bundles_post_ra>
// kernel: tpu_custom_call.1
= control target key start
LH: loop header
LB: loop body
LE: loop exit
PB: predicated region body
PF: predicated region fallthrough
CT: control target
= control target key end

     0   :  { %12 = vsyncpa [#allocation5], 0  ;;  %s250_s0 = inlined_call_operand.vmem [shape: f32[8,32], index: 0, kind: input, shape index: {}]   ;;  %s251_s1 = inlined_call_operand.vmem [shape: f32[32,16], index: 1, kind: input, shape index: {}]   ;;  %s252_s2 = inlined_call_operand.vmem [shape: f32[1,16], index: 2, kind: input, shape index: {}]   ;;  %s253_s3 = inlined_call_operand.vmem [shape: s32[8,1], index: 3, kind: input, shape index: {}]   ;;  %s254_s4 = inlined_call_operand.<no memory space> [shape: s32[1,1], index: 4, kind: input, shape index: {}]   ;;  %s255_s5 = inlined_call_operand.vmem [shape: f32[1,2], index: 5, kind: input, shape index: {}]   ;;  %s256_s6 = inlined_call_operand.hbm [shape: f32[1,1,128], index: 6, kind: output, shape index: {}]  }
   0x1   :  { %13 = vsyncpa [#allocation4], 0  ;;  %s29_s23 = sshll.u32 %s255_s5, 4  ;;  %s182_s24 = smov [#allocation3]   ;;  %s30_s23 = int_to_ptr.vmem [resolvable:$true] %s29_s23 }
   0x2   :  { %32 = dma.vmem_to_smem %s30_s23, 16, %s182_s24, [#allocation5]  }
   0x3   :  { %178 = dma.done.wait [#allocation5], 16  }
   0x4   :  { %179 = vsyncadd [#allocation5], 4294967280 }
   0x5   :  { %37 = sfence }
   0x6   :  { %v44_v0 = vld [vmem:[%s251_s1 + $0x10] sm:$0xff]  ;;  %v45_v1 = vld [vmem:[%s251_s1 + $0x18] sm:$0xff]  ;;  %v42_v2 = vld [vmem:[%s251_s1] sm:$0xff]  ;;  %v183_v5 = vmov 0   ;;  %vm53_vm0 = vcmask 261120   ;;  %v71_v10 = vlaneseq  ;;  %vm78_vm2 = vcmask 130048  }
   0x7   :  { %v48_v3 = vpack.c.bf16 %v45_v1, %v44_v0  ;;  %v43_v4 = vld [vmem:[%s251_s1 + $0x8] sm:$0xff]  ;;  %140 = vset.pattern.permute.xlu0 %v183_v5  ;;  %v70_v6 = vld [vmem:[%s253_s3] sm:$0xff]  ;;  %s133_s3 = sld [smem:[#allocation3 + $0x1]]  ;;  %v100_v28 = vstv %s254_s4  ;;  %vm103_vm4 = vcmask 7168   ;;  %s184_s15 = smov [#allocation6]  }
   0x8   :  { %74 = vperm.xlu0 %140, %v70_v6   ;;  %v47_v7 = vpack.c.bf16 %v43_v4, %v42_v2  ;;  %v41_v8 = vld [vmem:[%s250_s0] sm:$0xff]  ;;  %v72_v11 = vand.u32 127, %v71_v10  ;;  %s39_s0 = sld [smem:[#allocation3]]  ;;  %v96_v25 = vshrl.u32 %v71_v10, 7  ;;  %s121_s16 = sshll.u32 %s184_s15, 4  ;;  %s122_s16 = int_to_ptr.vmem [resolvable:$true] %s121_s16 }
   0x9   :  { %63 = vmatpush.bf16.msra.mxu0 %v48_v3  ;;  %v46_v9 = vpack.c.bf16 %v41_v8, %v41_v8  ;;  %v141_v12 = vld [vmem:[%s252_s2] ss:$0 sm:$0xff]  ;;  %s123_s18 = sshll.u32 %s256_s6, 4  ;;  %s124_s18 = int_to_ptr.hbm [resolvable:$true] %s123_s18 }
   0xa   :  { %vm101_vm3 = vcmp.lt.s32.totalorder %v96_v25, %v100_v28 }
   0xd   :  { %64 = vmatpush.bf16.msra.mxu0 %v47_v7 }
   0xe   :  { %s86_s13 = sadd.f32 %s133_s3, %s39_s0  ;;  %v90_v21 = vstv %s39_s0 }
  0x10   :  { %134 = vmatmul.msk.bf16.vlgmr.msra.gmra.mxu0 %vm53_vm0, %v46_v9  ;;  %v87_v22 = vstv %s86_s13 }
  0x7a   :  { %v75_v13 = vpop.permute.xlu0 %74 }
  0x7b   :  { %vm76_vm1 = vcmp.eq.s32.totalorder %v72_v11, %v75_v13 }
  0x8d   :  { %v66_v14 = vpop.f32.mrf.mxu0 }
  0x8e   :  { %v67_v15 = vadd.f32 %v141_v12, %v66_v14 }
  0x90   :  { %v82_v16 = vsel %vm76_vm1, -1e+10, %v67_v15  ;;  %v77_v17 = vsel %vm76_vm1, %v67_v15, 0.0 }
  0x91   :  { %v83_v18 = vsel %vm78_vm2, %v82_v16, -inf  ;;  %v79_v19 = vsel %vm78_vm2, %v77_v17, 0.0 }
  0x92   :  { %84 = vmax.xlane.f32.xlu1 %v83_v18  ;;  %80 = vadd.xlane.f32.xlu0 %v79_v19 }
  0x95   :  { %v68_v20 = vpop.f32.mrf.mxu0 }
 0x105   :  { %v85_v23 = vpop.xlane.xlu1 %84  ;;  %v81_v24 = vpop.xlane.xlu0 %80 }
 0x106   :  { %v91_v26 = vadd.f32 %v90_v21, %v85_v23  ;;  %v88_v27 = vsub.f32 %v87_v22, %v81_v24 }
 0x108   :  { %v92_v29 = vmax.f32 %v91_v26, 0.0  ;;  %v89_v30 = vmax.f32 %v88_v27, 0.0 }
 0x10a   :  { %v93_v31 = vadd.f32 %v92_v29, %v89_v30 }
 0x10c   :  { %v102_v32 = vsel %vm101_vm3, %v93_v31, 0.0 }
 0x10d   :  { %v104_v33 = vsel %vm103_vm4, %v102_v32, 0.0 }
 0x10e   :  { %105 = vadd.xlane.f32.xlu1 %v104_v33 }
 0x181   :  { %v106_v34 = vpop.xlane.xlu1 %105 }
 0x182   :  { %v107_v35 = vrot.slane %v106_v34, 4 }
 0x184   :  { %v108_v36 = vadd.f32 %v107_v35, %v106_v34 }
 0x186   :  { %v109_v37 = vrot.slane %v108_v36, 2 }
 0x188   :  { %v110_v38 = vadd.f32 %v109_v37, %v108_v36 }
 0x18a   :  { %v111_v39 = vrot.slane %v110_v38, 1 }
 0x18c   :  { %v112_v40 = vadd.f32 %v111_v39, %v110_v38 }
 0x18e   :  { %135 = vpush %v112_v40 }
 0x1bf   :  { %s136_s19 = spop %135 }
 0x1c0   :  { %v114_v41 = vstv %s136_s19 }
 0x1c1   :  { %115 = vst [vmem:[#allocation6] sm:$0x1] %v114_v41 }
 0x1c2   :  { %126 = dma.vmem_to_hbm [thread:$0]  %s122_s16, 16, %s124_s18, [#allocation4]  }
 0x1c3   :  { %180 = dma.done.wait [#allocation4], 16  }
 0x1c4   :  { %181 = vsyncadd [#allocation4], 4294967280 }
 0x1c5   :  { %131 = vsyncpa [#allocation4], 1 }
 0x1c6   :  { %132 = vsyncpa [#allocation5], 1 }

</bundles_post_ra>
